<compile_context>
chip_gen: v7x
topology: tpu7x:2x2x1
jax: 0.10.0
libtpu: 0.0.40
codegen_flags: <defaults>
</compile_context>

<pallas_src>
import jax
import jax.numpy as jnp
import numpy as np
from jax.experimental import pallas as pl
from jax.experimental.pallas import tpu as pltpu

_LANES = 128
_SUBLANES = 8
_MAX_ROWS_PER_BLOCK = 1024  # 1024 x 128 f32 = 512 KiB per input block (x2 inputs x2 bufs = 2 MiB)
_PAD_LOGIT = -1e9           # sigmoid(_PAD_LOGIT) == 0.0 exactly in f32


def _dice_partial_kernel(logits_ref, targets_ref, out_ref):
    """Accumulate per-lane partial dice sums for one (batch, chunk) tile.

    out_ref block is (1, 3, 128):
      sublane 0: sum over rows of sigmoid(logits) * targets   (intersection)
      sublane 1: sum over rows of sigmoid(logits)             (m1 row-sum)
      sublane 2: sum over rows of targets                     (m2 row-sum)
    """
    chunk = pl.program_id(1)

    @pl.when(chunk == 0)
    def _init():
        out_ref[...] = jnp.zeros_like(out_ref)

    x = logits_ref[0].astype(jnp.float32)   # (TR, 128)
    t = targets_ref[0].astype(jnp.float32)  # (TR, 128)

    # sigmoid via a single transcendental (tanh) instead of exp + reciprocal.
    probs = 0.5 * (jnp.tanh(0.5 * x) + 1.0)

    inter = jnp.sum(probs * t, axis=0, keepdims=True)  # (1, 128) sublane reduce
    m1 = jnp.sum(probs, axis=0, keepdims=True)         # (1, 128)
    m2 = jnp.sum(t, axis=0, keepdims=True)             # (1, 128)

    out_ref[...] += jnp.concatenate([inter, m1, m2], axis=0)[None]


def soft_dice_loss(logits, targets, smooth=1.0):
    """Pallas implementation of SoftDiceLoss.forward(logits, targets)."""
    assert logits.shape == targets.shape, (logits.shape, targets.shape)
    bs = logits.shape[0]
    n = int(np.prod(logits.shape[1:]))

    x = logits.reshape(bs, n)
    t = targets.reshape(bs, n)

    # Choose row tiling: rows = ceil(n / 128), padded to a multiple of 8
    # (small inputs) or of _MAX_ROWS_PER_BLOCK (large inputs, chunked grid).
    rows = (n + _LANES - 1) // _LANES
    if rows <= _MAX_ROWS_PER_BLOCK:
        rows_padded = max(_SUBLANES,
                          ((rows + _SUBLANES - 1) // _SUBLANES) * _SUBLANES)
        tile_rows = rows_padded
    else:
        rows_padded = ((rows + _MAX_ROWS_PER_BLOCK - 1)
                       // _MAX_ROWS_PER_BLOCK) * _MAX_ROWS_PER_BLOCK
        tile_rows = _MAX_ROWS_PER_BLOCK
    n_padded = rows_padded * _LANES

    if n_padded != n:
        pad = n_padded - n
        # sigmoid(pad logit) == 0 and target pad == 0 -> padding adds 0 to all sums.
        x = jnp.pad(x, ((0, 0), (0, pad)), constant_values=_PAD_LOGIT)
        t = jnp.pad(t, ((0, 0), (0, pad)), constant_values=0.0)

    x3 = x.reshape(bs, rows_padded, _LANES)
    t3 = t.reshape(bs, rows_padded, _LANES)
    num_chunks = rows_padded // tile_rows

    partials = pl.pallas_call(
        _dice_partial_kernel,
        out_shape=jax.ShapeDtypeStruct((bs, 3, _LANES), jnp.float32),
        grid_spec=pltpu.PrefetchScalarGridSpec(
            num_scalar_prefetch=0,
            grid=(bs, num_chunks),  # reduction (chunk) axis last
            in_specs=[
                pl.BlockSpec((1, tile_rows, _LANES), lambda b, c: (b, c, 0)),
                pl.BlockSpec((1, tile_rows, _LANES), lambda b, c: (b, c, 0)),
            ],
            out_specs=pl.BlockSpec((1, 3, _LANES), lambda b, c: (b, 0, 0)),
        ),
        compiler_params=pltpu.CompilerParams(
            dimension_semantics=("parallel", "arbitrary")),
    )(x3, t3)

    # Final cross-lane reduce + dice arithmetic: a handful of scalar ops, done
    # outside the kernel so the grid stays parallel / accumulator-free.
    inter = jnp.sum(partials[:, 0, :], axis=-1)   # (B,)
    m1s = jnp.sum(partials[:, 1, :], axis=-1)     # (B,)
    m2s = jnp.sum(partials[:, 2, :], axis=-1)     # (B,)
    score = 2.0 * (inter + smooth) / (m1s + m2s + smooth)
    return 1.0 - jnp.sum(score) / bs


def reference_soft_dice_loss(logits, targets):
    """Pure-JAX replica of the PyTorch forward, for verification."""
    bs = targets.shape[0]
    smooth = 1.0
    probs = jax.nn.sigmoid(logits.astype(jnp.float32))
    m1 = probs.reshape(bs, -1)
    m2 = targets.reshape(bs, -1).astype(jnp.float32)
    intersection = (m1 * m2).sum(1)
    score = 2.0 * (intersection + smooth) / (m1.sum(1) + m2.sum(1) + smooth)
    return 1.0 - score.sum() / bs


if __name__ == "__main__":
    B, C, H, W = 2, 4, 16, 16
    key = jax.random.PRNGKey(0)
    k1, k2 = jax.random.split(key, 2)

    logits = jax.random.normal(k1, (B, C, H, W), jnp.float32)
    targets = (jax.random.uniform(k2, (B, C, H, W)) > 0.5).astype(jnp.float32)

    loss = soft_dice_loss(logits, targets)
    loss = jax.block_until_ready(loss)

    ref = reference_soft_dice_loss(logits, targets)
    np.testing.assert_allclose(np.asarray(loss), np.asarray(ref),
                               rtol=1e-4, atol=1e-4)

    print("KERNEL_OK")
</pallas_src>

<mosaic_0001>
module attributes {stable_mosaic.version = 11 : i64} {
  func.func @_dice_partial_kernel(%arg0: i32, %arg1: i32, %arg2: memref<1x8x128xf32, #tpu.memory_space<vmem>>, %arg3: memref<1x8x128xf32, #tpu.memory_space<vmem>>, %arg4: memref<1x3x128xf32, #tpu.memory_space<vmem>>) attributes {dimension_semantics = [#tpu.dimension_semantics<parallel>, #tpu.dimension_semantics<arbitrary>], iteration_bounds = array<i64: 2, 1>, scalar_prefetch = 0 : i64, scratch_operands = 0 : i64, tpu.core_type = #tpu.core_type<tc>, window_params = [{transform_indices = @transform_0, window_bounds = array<i64: 1, 8, 128>}, {transform_indices = @transform_1, window_bounds = array<i64: 1, 8, 128>}, {transform_indices = @transform_2, window_bounds = array<i64: 1, 3, 128>}]} {
    %c0_i32 = arith.constant 0 : i32
    %0 = arith.cmpi eq, %arg1, %c0_i32 : i32
    %1 = arith.extui %0 : i1 to i32
    %c0_i32_0 = arith.constant 0 : i32
    %2 = arith.cmpi ne, %1, %c0_i32_0 : i32
    scf.if %2 {
      %cst_17 = arith.constant 0.000000e+00 : f32
      %26 = vector.broadcast %cst_17 : f32 to vector<1x3x128xf32>
      %c0_18 = arith.constant 0 : index
      %c0_19 = arith.constant 0 : index
      %c0_20 = arith.constant 0 : index
      %27 = vector.load %arg4[%c0_18, %c0_19, %c0_20] : memref<1x3x128xf32, #tpu.memory_space<vmem>>, vector<1x3x128xf32>
      tpu.vector_store %arg4[%c0_18, %c0_19, %c0_20], %26 {strides = array<i32>} : memref<1x3x128xf32, #tpu.memory_space<vmem>>, vector<1x3x128xf32>,
    } else {
    }
    %c0 = arith.constant 0 : index
    %c0_1 = arith.constant 0 : index
    %c0_2 = arith.constant 0 : index
    %3 = vector.load %arg2[%c0, %c0_1, %c0_2] : memref<1x8x128xf32, #tpu.memory_space<vmem>>, vector<1x8x128xf32>
    %4 = vector.shape_cast %3 : vector<1x8x128xf32> to vector<8x128xf32>
    %c0_3 = arith.constant 0 : index
    %c0_4 = arith.constant 0 : index
    %c0_5 = arith.constant 0 : index
    %5 = vector.load %arg3[%c0_3, %c0_4, %c0_5] : memref<1x8x128xf32, #tpu.memory_space<vmem>>, vector<1x8x128xf32>
    %6 = vector.shape_cast %5 : vector<1x8x128xf32> to vector<8x128xf32>
    %cst = arith.constant 5.000000e-01 : f32
    %7 = vector.broadcast %cst : f32 to vector<8x128xf32>
    %8 = arith.mulf %7, %4 : vector<8x128xf32>
    %9 = math.tanh %8 : vector<8x128xf32>
    %cst_6 = arith.constant 1.000000e+00 : f32
    %10 = vector.broadcast %cst_6 : f32 to vector<8x128xf32>
    %11 = arith.addf %9, %10 : vector<8x128xf32>
    %cst_7 = arith.constant 5.000000e-01 : f32
    %12 = vector.broadcast %cst_7 : f32 to vector<8x128xf32>
    %13 = arith.mulf %12, %11 : vector<8x128xf32>
    %14 = arith.mulf %13, %6 : vector<8x128xf32>
    %cst_8 = arith.constant dense<0.000000e+00> : vector<128xf32>
    %15 = vector.multi_reduction <add>, %14, %cst_8 [0] : vector<8x128xf32> to vector<128xf32>
    %16 = vector.shape_cast %15 : vector<128xf32> to vector<1x128xf32>
    %cst_9 = arith.constant dense<0.000000e+00> : vector<128xf32>
    %17 = vector.multi_reduction <add>, %13, %cst_9 [0] : vector<8x128xf32> to vector<128xf32>
    %18 = vector.shape_cast %17 : vector<128xf32> to vector<1x128xf32>
    %cst_10 = arith.constant dense<0.000000e+00> : vector<128xf32>
    %19 = vector.multi_reduction <add>, %6, %cst_10 [0] : vector<8x128xf32> to vector<128xf32>
    %20 = vector.shape_cast %19 : vector<128xf32> to vector<1x128xf32>
    %c0_11 = arith.constant 0 : index
    %c0_12 = arith.constant 0 : index
    %c0_13 = arith.constant 0 : index
    %21 = vector.load %arg4[%c0_11, %c0_12, %c0_13] : memref<1x3x128xf32, #tpu.memory_space<vmem>>, vector<1x3x128xf32>
    %22 = tpu.concatenate %16, %18, %20 in 0 : vector<1x128xf32>, vector<1x128xf32>, vector<1x128xf32> -> vector<3x128xf32>
    %23 = vector.shape_cast %22 : vector<3x128xf32> to vector<1x3x128xf32>
    %24 = arith.addf %21, %23 : vector<1x3x128xf32>
    %c0_14 = arith.constant 0 : index
    %c0_15 = arith.constant 0 : index
    %c0_16 = arith.constant 0 : index
    %25 = vector.load %arg4[%c0_14, %c0_15, %c0_16] : memref<1x3x128xf32, #tpu.memory_space<vmem>>, vector<1x3x128xf32>
    tpu.vector_store %arg4[%c0_14, %c0_15, %c0_16], %24 {strides = array<i32>} : memref<1x3x128xf32, #tpu.memory_space<vmem>>, vector<1x3x128xf32>,
    return
  }
  func.func @transform_0(%arg0: i32, %arg1: i32) -> (i32, i32, i32) {
    %c0_i32 = arith.constant 0 : i32
    %c0_i32_0 = arith.constant 0 : i32
    return %arg0, %arg1, %c0_i32 : i32, i32, i32
  }
  func.func @transform_1(%arg0: i32, %arg1: i32) -> (i32, i32, i32) {
    %c0_i32 = arith.constant 0 : i32
    %c0_i32_0 = arith.constant 0 : i32
    return %arg0, %arg1, %c0_i32 : i32, i32, i32
  }
  func.func @transform_2(%arg0: i32, %arg1: i32) -> (i32, i32, i32) {
    %c0_i32 = arith.constant 0 : i32
    %c0_i32_0 = arith.constant 0 : i32
    %c0_i32_1 = arith.constant 0 : i32
    return %arg0, %c0_i32, %c0_i32_0 : i32, i32, i32
  }
}

</mosaic_0001>

<bundles_post_ra>
// kernel: tpu_custom_call.1
= control target key start
LH: loop header
LB: loop body
LE: loop exit
PB: predicated region body
PF: predicated region fallthrough
CT: control target
= control target key end

     0   :  { %7 = vsyncpa [#allocation3], 0  ;;  %s737_s0 = inlined_call_operand.hbm [shape: f32[2,8,128], index: 0, kind: input, shape index: {}]   ;;  %s738_s1 = inlined_call_operand.hbm [shape: f32[2,8,128], index: 1, kind: input, shape index: {}]   ;;  %s739_s2 = inlined_call_operand.vmem [shape: f32[2,3,128], index: 2, kind: output, shape index: {}]  }
   0x1   :  { %9 = vsyncpa [#allocation3 + $0x1], 0 }
   0x2   :  { %10 = vsyncpa [#allocation5], 0 }
   0x3   :  { %12 = vsyncpa [#allocation5 + $0x1], 0  ;;  %s560_s9 = smov 0   ;;  %s562_s10 = smov 0  }
   0x4   :  { %s564_s11 = smov 0   ;;  %s566_s12 = smov 0  }
   0x5   :  { %s568_s13 = smov 0   ;;  %s570_s14 = smov 0  }
   0x6 LB: > { %s349_s15 = sadd.s32 4294967295, %s540_s14   ;;  %s30_s16 = sadd.s32 1, %s536_s13  ;;  %s540_s14 = sphi %s570_s14, %s18_s14   ;;  %s536_s13 = sphi %s568_s13, %s753_s13   ;;  %s532_s12 = sphi %s566_s12, %s752_s12   ;;  %s528_s11 = sphi %s564_s11, %s751_s11   ;;  %s524_s10 = sphi %s562_s10, %s750_s10   ;;  %s520_s9 = sphi %s560_s9, %s749_s9  }
   0x7   : > { %p32_p0 = scmp.ge.s32.totalorder %s30_s16, 2  ;;  %s39_s17 = sadd.s32 1, %s528_s11 }
   0x8   : > { %p46_p1 = scmp.ne.s32.totalorder %s528_s11, %s524_s10  ;;  %p47_p2 = scmp.eq.s32.totalorder %s540_s14, 0 }
   0x9   : > { %s755_s16 = smov (%p32_p0, %s30_s16), 0  ;;  %p52_p4 = scmp.ne.s32.totalorder %s524_s10, %s520_s9 }
   0xa   : > { %p596_p3 = por %p47_p2, %p46_p1  ;;  %s34_s19 = ssub.s32 %s536_s13, %s755_s16 }
   0xb   : > { %p53_p5 = scmp.eq.s32.totalorder %s349_s15, 0  ;;  %p37_p6 = scmp.eq.s32.totalorder %s34_s19, 0 }
   0xc   : > { %p374_p8 = scmp.lt.s32.totalorder %s540_s14, 2  ;;  %s612_s22 = sand.u32 1, %s528_s11  }
   0xd   : > { %p603_p7 = por %p53_p5, %p52_p4  ;;  %s354_s23 = sshll.u32 %s536_s13, 7 }
   0xe   : > { %s609_s21 = scalar_select %p37_p6, %s528_s11, %s39_s17  }
   0xf   : > { %s742_s20 = scalar_select %p603_p7, 1, 0 }
  0x10   : > { %s353_s24 = sshll.u32 %s612_s22, 3  ;;  %s621_s27 = scalar_lea.hbm %s737_s0, %s354_s23 }
  0x11   : > { %s134_s28 = scalar_lea.vmem [#allocation2], %s353_s24  ;;  %p627_p9 = pnand %p374_p8, %p596_p3 }
  0x12   : > { %s142_s29 = sshll.u32 %s134_s28, 4  ;;  %s131_s3 = scalar_lea.sflag [#allocation3], %s612_s22  ;;  %s631_s29 = int_to_ptr.vmem [resolvable:$true] %s142_s29 }
  0x13   : > { %s426_s4 = scalar_lea.hbm %s621_s27, 128  ;;  %p428_p13 = pneg %p627_p9 }
  0x14   : > { %p427_p12 = scmp.ne.s32.totalorder %s621_s27, %s426_s4  ;;  %s431_s7 = scalar_lea.hbm %s737_s0, 256 }
  0x15   : > { %p432_p2 = scmp.lt.u32.totalorder %s621_s27, %s737_s0  ;;  %p433_p3 = scmp.lt.u32.totalorder %s431_s7, %s426_s4 }
  0x16   : > { %p429_p0 = pnand %p428_p13, %p427_p12  ;;  %p435_p5 = scmp.lt.u32.totalorder %s426_s4, %s621_s27 }
  0x17   : > { %p434_p4 = por %p433_p3, %p432_p2 }
  0x18   : > { %p430_p1 = pneg %p429_p0 }
  0x19   : > { %p436_p6 = por %p435_p5, %p434_p4 }
  0x1b   : > { %p437_p8 = pnand %p436_p6, %p430_p1 }
  0x1d   : > { %440 = shalt.err (!%p437_p8)
}
  0x1e   : > { %s441_s15 = scalar_lea.vmem %s631_s29, 128  ;;  %s542_s17 = smov [#allocation2]  }
  0x1f   : > { %p442_p12 = scmp.ne.s32.totalorder %s631_s29, %s441_s15  ;;  %s446_s18 = sshll.u32 %s542_s17, 4  ;;  %s447_s18 = int_to_ptr.vmem [resolvable:$false] %s446_s18 }
  0x20   : > { %s448_s19 = scalar_lea.vmem %s447_s18, 256  ;;  %p449_p11 = scmp.lt.s32.totalorder %s631_s29, %s447_s18 }
  0x21   : > { %p444_p0 = pnand %p442_p12, %p428_p13  ;;  %p450_p2 = scmp.lt.s32.totalorder %s448_s19, %s441_s15 }
  0x23   : > { %p445_p10 = pneg %p444_p0  ;;  %p451_p3 = por %p450_p2, %p449_p11 }
  0x25   : > { %p452_p4 = pnand %p451_p3, %p445_p10 }
  0x27   : > { %455 = shalt.err (!%p452_p4)
}
  0x28   : > { %370 = dma.hbm_to_vmem [thread:$0]  (!%p627_p9), %s621_s27, 128, %s631_s29, %s131_s3  }
  0x29   : > { %p744_p1 = scmp.lt.s32.totalorder %s540_s14, 3  ;;  %p745_p5 = scmp.ge.s32.totalorder %s540_s14, 1 }
  0x2a   : > { %s674_s4 = scalar_lea.hbm %s738_s1, %s354_s23  ;;  %s153_s5 = scalar_lea.vmem [#allocation4], %s353_s24 }
  0x2b   : > { %p665_p6 = pnand %p745_p5, %p744_p1  ;;  %s161_s6 = sshll.u32 %s153_s5, 4  ;;  %s162_s6 = int_to_ptr.vmem [resolvable:$true] %s161_s6 }
  0x2c   : > { %s150_s27 = scalar_lea.sflag [#allocation5], %s612_s22  ;;  %s456_s29 = scalar_lea.hbm %s674_s4, 128 }
  0x2d   : > { %s746_s25 = scalar_select %p665_p6, 1, 0 }
  0x2e   : > { %p457_p10 = scmp.ne.s32.totalorder %s674_s4, %s456_s29  ;;  %s461_s23 = scalar_lea.hbm %s738_s1, 256 }
  0x2f   : > { %p462_p12 = scmp.lt.u32.totalorder %s674_s4, %s738_s1  ;;  %p463_p0 = scmp.lt.u32.totalorder %s461_s23, %s456_s29 }
  0x30   : > { %p459_p11 = pnand %p457_p10, %p428_p13  ;;  %p465_p3 = scmp.lt.u32.totalorder %s456_s29, %s674_s4 }
  0x31   : > { %p464_p2 = por %p463_p0, %p462_p12 }
  0x32   : > { %p460_p8 = pneg %p459_p11 }
  0x33   : > { %p466_p4 = por %p465_p3, %p464_p2 }
  0x35   : > { %p467_p1 = pnand %p466_p4, %p460_p8 }
  0x37   : > { %470 = shalt.err (!%p467_p1)
}
  0x38   : > { %s471_s22 = scalar_lea.vmem %s162_s6, 128  ;;  %s543_s24 = smov [#allocation4]  }
  0x39   : > { %p472_p5 = scmp.ne.s32.totalorder %s162_s6, %s471_s22  ;;  %s476_s15 = sshll.u32 %s543_s24, 4  ;;  %s477_s15 = int_to_ptr.vmem [resolvable:$false] %s476_s15 }
  0x3a   : > { %s478_s17 = scalar_lea.vmem %s477_s15, 256  ;;  %p479_p7 = scmp.lt.s32.totalorder %s162_s6, %s477_s15 }
  0x3b   : > { %p474_p10 = pnand %p472_p5, %p428_p13  ;;  %p480_p6 = scmp.lt.s32.totalorder %s478_s17, %s471_s22 }
  0x3d   : > { %p475_p11 = pneg %p474_p10  ;;  %p481_p0 = por %p480_p6, %p479_p7 }
  0x3f   : > { %p482_p12 = pnand %p481_p0, %p475_p11 }
  0x41   : > { %485 = shalt.err (!%p482_p12)
}
  0x42   : > { %373 = dma.hbm_to_vmem [thread:$0]  (!%p627_p9), %s674_s4, 128, %s162_s6, %s150_s27  }
  0x43   : > { %p747_p8 = scmp.ne.s32.totalorder %s746_s25, 0 }
  0x44   : > { %s172_s18 = sand.u32 (!%p747_p8), 1, %s524_s10   ;;  %p748_p13 = scmp.ne.s32.totalorder (!%p747_p8), %s742_s20, 0 }
  0x45   : > { %170 = sbr.rel (%p747_p8) target bundleno = 116 (0x74), region = 28  ;;  %s358_s19 = sshll.u32 (!%p747_p8), %s172_s18, 3 }
  0x46   : > { %s173_s26 = scalar_lea.sflag (!%p747_p8), [#allocation3], %s172_s18  ;;  %s176_s28 = scalar_lea.vmem (!%p747_p8), [#allocation2], %s358_s19 }
  0x4c   : > { %511 = dma.done.wait (%p748_p13), %s173_s26, 128  }
  0x4d   : > { %513 = vsyncadd (%p748_p13), %s173_s26, 4294967168  ;;  %s182_s5 = scalar_lea.sflag [#allocation5], %s172_s18  ;;  %s185_s29 = scalar_lea.vmem [#allocation4], %s358_s19 }
  0x4e   : > { %515 = dma.done.wait (%p748_p13), %s182_s5, 128  }
  0x4f   : > { %517 = vsyncadd (%p748_p13), %s182_s5, 4294967168  ;;  %p210_p7 = scmp.lt.s32.totalorder %s532_s12, 1  ;;  %v544_v0 = vmov 0.0   ;;  %v219_v1 = vld [vmem:[%s176_s28] sm:$0xff]  ;;  %v220_v3 = vld [vmem:[%s185_s29] sm:$0xff]  ;;  %vm245_vm0 = vcmask 1040384  }
  0x50   : > { %v221_v2 = vmul.f32 0.5, %v219_v1  ;;  %v238_v4 = vrot.slane %v220_v3, 4  ;;  %vm247_vm1 = vcmask 1041408  }
  0x51   : > { %s757_s12 = smov (!%p210_p7, %s532_s12), 1 }
  0x52   : > { %s360_s30 = sshll.u32 %s757_s12, 2  ;;  %424 = vtanh.f32 %v221_v2  ;;  %v239_v6 = vadd.f32 %v238_v4, %v220_v3 }
  0x53   : > { %s714_s6 = scalar_lea.vmem %s739_s2, %s360_s30 }
  0x54   : > { %218 = vst [vmem:[%s714_s6] sm:$0x7] %v544_v0  ;;  %v240_v9 = vrot.slane %v239_v6, 2 }
  0x56   : > { %v241_v14 = vadd.f32 %v240_v9, %v239_v6 }
  0x58   : > { %v242_v19 = vrot.slane %v241_v14, 1 }
  0x5a   : > { %v243_v24 = vadd.f32 %v242_v19, %v241_v14 }
  0x5b   : > { %v244_v26 = vld [vmem:[%s714_s6] sm:$0x7] }
  0x5c   : > { %v425_v5 = vpop.eup %424 }
  0x5d   : > { %v223_v7 = vadd.f32 1.0, %v425_v5 }
  0x5f   : > { %v224_v8 = vmul.f32 0.5, %v223_v7 }
  0x61   : > { %v225_v10 = vmul.f32 %v224_v8, %v220_v3  ;;  %v232_v11 = vrot.slane %v224_v8, 4 }
  0x63   : > { %v226_v12 = vrot.slane %v225_v10, 4  ;;  %v233_v13 = vadd.f32 %v232_v11, %v224_v8 }
  0x65   : > { %v227_v15 = vadd.f32 %v226_v12, %v225_v10  ;;  %v234_v16 = vrot.slane %v233_v13, 2 }
  0x67   : > { %v228_v17 = vrot.slane %v227_v15, 2  ;;  %v235_v18 = vadd.f32 %v234_v16, %v233_v13 }
  0x69   : > { %v229_v20 = vadd.f32 %v228_v17, %v227_v15  ;;  %v236_v21 = vrot.slane %v235_v18, 1 }
  0x6b   : > { %v230_v22 = vrot.slane %v229_v20, 1  ;;  %v237_v23 = vadd.f32 %v236_v21, %v235_v18 }
  0x6d   : > { %v231_v25 = vadd.f32 %v230_v22, %v229_v20 }
  0x6f   : > { %v246_v27 = vsel %vm245_vm0, %v231_v25, %v237_v23 }
  0x70   : > { %v248_v28 = vsel %vm247_vm1, %v246_v27, %v243_v24 }
  0x71   : > { %v249_v29 = vadd.f32 %v248_v28, %v244_v26 }
  0x73   : > { %250 = vst [vmem:[%s714_s6] sm:$0x7] %v249_v29 }
  0x74 PF: > { %s18_s14 = sadd.s32 1, %s540_s14   ;;  %s749_s9 = smov %s524_s10 }
  0x75   : > { %p15_p9 = scmp.ge.s32.totalorder %s18_s14, 4   ;;  %s750_s10 = smov %s528_s11 }
  0x76   : > { %s751_s11 = smov %s609_s21  ;;  %s752_s12 = smov %s536_s13 }
  0x77   : > { %s753_s13 = smov %s755_s16  ;;  %17 = sbr.rel (!%p15_p9) target bundleno = 6 (0x6), region = 85 }
  0x7e   :  { %270 = vsyncpa [#allocation3], 1 }
  0x7f   :  { %272 = vsyncpa [#allocation3 + $0x1], 1 }
  0x80   :  { %273 = vsyncpa [#allocation5], 1 }
  0x81   :  { %275 = vsyncpa [#allocation5 + $0x1], 1 }

</bundles_post_ra>
